<compile_context>
chip_gen: v5e
topology: v5e:2x2
jax: 0.10.0
libtpu: 0.0.40
codegen_flags: <defaults>
</compile_context>

<pallas_src>
import functools

import jax
import jax.numpy as jnp
from jax.experimental import pallas as pl
from jax.experimental.pallas import tpu as pltpu


def make_positional_encoding_table(pad_size: int, embed: int) -> jnp.ndarray:
    """pe[pos, i] = pos / 10000**((i//2)*2/embed); sin on even cols, cos on odd."""
    pos = jnp.arange(pad_size, dtype=jnp.float32)[:, None]          # (P, 1)
    i = jnp.arange(embed, dtype=jnp.float32)[None, :]                # (1, E)
    exponent = (jnp.floor(i / 2.0) * 2.0) / float(embed)
    angle = pos / jnp.power(10000.0, exponent)                       # (P, E)
    even_mask = (jnp.arange(embed) % 2 == 0)[None, :]
    pe = jnp.where(even_mask, jnp.sin(angle), jnp.cos(angle))
    return pe.astype(jnp.float32)


# ---------------------------------------------------------------------------
# Kernel bodies (pure elementwise; work for both the 2-D folded and squeezed
# 3-D layouts -- blocks always arrive as 2-D (rows, lanes) tiles).
# ---------------------------------------------------------------------------
def _add_pe_kernel(x_ref, pe_ref, o_ref):
    x = x_ref[...]
    pe = pe_ref[...]
    if x.dtype == jnp.bfloat16:
        out = x + pe                                   # bf16 VALU on v6e/v7x
    else:
        out = x.astype(jnp.float32) + pe.astype(jnp.float32)
    o_ref[...] = out.astype(o_ref.dtype)


def _add_pe_dropout_kernel(x_ref, pe_ref, u_ref, o_ref, *, dropout_p):
    x = x_ref[...]
    pe = pe_ref[...]
    if x.dtype == jnp.bfloat16:
        s = x + pe
        scale = jnp.bfloat16(1.0 / (1.0 - dropout_p))
        zero = jnp.bfloat16(0.0)
    else:
        s = x.astype(jnp.float32) + pe.astype(jnp.float32)
        scale = jnp.float32(1.0 / (1.0 - dropout_p))
        zero = jnp.float32(0.0)
    # keep with prob (1 - p); uniforms are generated host-side (portable).
    keep = u_ref[...] >= jnp.float32(dropout_p)
    out = jnp.where(keep, s * scale, zero)
    o_ref[...] = out.astype(o_ref.dtype)


# ---------------------------------------------------------------------------
# Tile pickers: ~2 MiB blocks (safe on v5e's 16 MiB scoped default, ~85% of HBM
# roofline); cdiv-based tiling so any P / B works without full-axis fallbacks.
# ---------------------------------------------------------------------------
_TARGET_BLOCK_BYTES = 2 * 1024 * 1024


def _pick_rows(total_rows: int, lane_elems: int, itemsize: int) -> int:
    if total_rows <= 8:
        return total_rows                     # full axis satisfies (8,128) rule
    rows = _TARGET_BLOCK_BYTES // max(1, lane_elems * itemsize)
    rows = min(total_rows, max(8, rows))
    rows = (rows // 8) * 8                    # multiple of 8 (sublane constraint)
    if rows >= total_rows:
        return total_rows
    return rows


def positional_encoding_forward(x, pe, *, dropout_p=0.1, seed=0, training=False):
    """out = dropout(x + pe).  x: (B, P, E), pe: (P, E).

    Note: callers must vary `seed` per dropout site / call, otherwise masks repeat.
    """
    B, P, E = x.shape
    assert pe.shape == (P, E)
    # Ship PE at x's width (halves its HBM bytes for bf16 inputs).
    pe = pe.astype(x.dtype)

    p = float(dropout_p)
    use_dropout = bool(training) and p > 0.0
    if use_dropout and p >= 1.0:
        # Drop everything; 1/(1-p) undefined, so short-circuit.
        return jnp.zeros_like(x)

    u = None
    if use_dropout:
        u = jax.random.uniform(jax.random.PRNGKey(int(seed)), (B, P, E),
                               dtype=jnp.float32)

    itemsize = jnp.dtype(x.dtype).itemsize
    row_elems = P * E
    cparams = pltpu.CompilerParams
    vmem_limit = 48 * 1024 * 1024

    # ----- Folded lane-dense path: E not 128-aligned but P*E is ---------------
    if (E % 128 != 0) and (row_elems % 128 == 0) and (row_elems * itemsize <= 512 * 1024):
        xf = x.reshape(B, row_elems)
        pef = pe.reshape(1, row_elems)
        tb = _pick_rows(B, row_elems, itemsize)
        grid = (pl.cdiv(B, tb),)

        in_specs = [
            pl.BlockSpec((tb, row_elems), lambda i: (i, 0)),    # x rows
            pl.BlockSpec((1, row_elems), lambda i: (0, 0)),     # pe: resident, DMA'd once
        ]
        operands = [xf, pef]
        if use_dropout:
            in_specs.append(pl.BlockSpec((tb, row_elems), lambda i: (i, 0)))
            operands.append(u.reshape(B, row_elems))
            kernel = functools.partial(_add_pe_dropout_kernel, dropout_p=p)
        else:
            kernel = _add_pe_kernel

        out2d = pl.pallas_call(
            kernel,
            out_shape=jax.ShapeDtypeStruct((B, row_elems), x.dtype),
            grid=grid,
            in_specs=in_specs,
            out_specs=pl.BlockSpec((tb, row_elems), lambda i: (i, 0)),
            compiler_params=cparams(dimension_semantics=("parallel",),
                                    vmem_limit_bytes=vmem_limit),
        )(*operands)
        return out2d.reshape(B, P, E)

    # ----- General 3-D path (lane-dense when E % 128 == 0) --------------------
    tp = _pick_rows(P, E, itemsize)
    # Batch is the INNERMOST (fastest) grid axis so the PE block index is constant
    # across consecutive steps and Pallas skips re-fetching the PE tile.
    grid = (pl.cdiv(P, tp), B)

    in_specs = [
        pl.BlockSpec((None, tp, E), lambda pi, b: (b, pi, 0)),   # x
        pl.BlockSpec((tp, E), lambda pi, b: (pi, 0)),            # pe (revisited, no re-DMA)
    ]
    operands = [x, pe]
    if use_dropout:
        in_specs.append(pl.BlockSpec((None, tp, E), lambda pi, b: (b, pi, 0)))
        operands.append(u)
        kernel = functools.partial(_add_pe_dropout_kernel, dropout_p=p)
    else:
        kernel = _add_pe_kernel

    out = pl.pallas_call(
        kernel,
        out_shape=jax.ShapeDtypeStruct((B, P, E), x.dtype),
        grid=grid,
        in_specs=in_specs,
        out_specs=pl.BlockSpec((None, tp, E), lambda pi, b: (b, pi, 0)),
        compiler_params=cparams(dimension_semantics=("parallel", "parallel"),
                                vmem_limit_bytes=vmem_limit),
    )(*operands)
    return out


if __name__ == "__main__":
    # Shapes consistent with the module: batch=2, pad_size=8, embed=32.
    B, P, E = 2, 8, 32
    dropout_p = 0.1

    key = jax.random.PRNGKey(0)
    x = jax.random.normal(key, (B, P, E), dtype=jnp.float32)
    pe = make_positional_encoding_table(P, E)
    expected = x + pe[None, :, :]
    scale = 1.0 / (1.0 - dropout_p)

    # Eval mode (dropout = identity): exact match with x + pe (folded lane-dense path).
    out_eval = jax.block_until_ready(
        positional_encoding_forward(x, pe, dropout_p=dropout_p, seed=0, training=False)
    )
    assert out_eval.shape == (B, P, E)
    assert jnp.allclose(out_eval, expected, atol=1e-6), "eval-mode mismatch"

    # Train mode: every element is either 0 (dropped) or (x + pe)/(1-p) (kept).
    out_train = jax.block_until_ready(
        positional_encoding_forward(x, pe, dropout_p=dropout_p, seed=1234, training=True)
    )
    err = jnp.minimum(jnp.abs(out_train), jnp.abs(out_train - expected * scale))
    assert out_train.shape == (B, P, E)
    assert float(err.max()) < 1e-5, "train-mode dropout values inconsistent"

    # Lane-aligned (E % 128 == 0) sequence-tiled path, eval + train.
    B2, P2, E2 = 2, 16, 128
    x2 = jax.random.normal(jax.random.PRNGKey(1), (B2, P2, E2), dtype=jnp.float32)
    pe2 = make_positional_encoding_table(P2, E2)
    exp2 = x2 + pe2[None, :, :]

    out2 = jax.block_until_ready(
        positional_encoding_forward(x2, pe2, dropout_p=dropout_p, seed=0, training=False)
    )
    assert jnp.allclose(out2, exp2, atol=1e-6), "aligned-path eval mismatch"

    out3 = jax.block_until_ready(
        positional_encoding_forward(x2, pe2, dropout_p=dropout_p, seed=7, training=True)
    )
    err3 = jnp.minimum(jnp.abs(out3), jnp.abs(out3 - exp2 * scale))
    assert float(err3.max()) < 1e-5, "aligned-path train mismatch"

    print("KERNEL_OK")
</pallas_src>

<mosaic_0001>
module attributes {stable_mosaic.version = 11 : i64} {
  func.func @_add_pe_kernel(%arg0: i32, %arg1: memref<2x256xf32, #tpu.memory_space<vmem>>, %arg2: memref<1x256xf32, #tpu.memory_space<vmem>>, %arg3: memref<2x256xf32, #tpu.memory_space<vmem>>) attributes {dimension_semantics = [#tpu.dimension_semantics<parallel>], iteration_bounds = array<i64: 1>, scalar_prefetch = 0 : i64, scratch_operands = 0 : i64, tpu.core_type = #tpu.core_type<tc>, window_params = [{transform_indices = @transform_0, window_bounds = array<i64: 2, 256>}, {pipeline_mode = #tpu.pipeline_mode<synchronous>, transform_indices = @transform_1, window_bounds = array<i64: 1, 256>}, {transform_indices = @transform_2, window_bounds = array<i64: 2, 256>}]} {
    %c0 = arith.constant 0 : index
    %c0_0 = arith.constant 0 : index
    %0 = vector.load %arg1[%c0, %c0_0] : memref<2x256xf32, #tpu.memory_space<vmem>>, vector<2x256xf32>
    %c0_1 = arith.constant 0 : index
    %c0_2 = arith.constant 0 : index
    %1 = vector.load %arg2[%c0_1, %c0_2] : memref<1x256xf32, #tpu.memory_space<vmem>>, vector<1x256xf32>
    %2 = vector.broadcast %1 : vector<1x256xf32> to vector<2x256xf32>
    %3 = arith.addf %0, %2 : vector<2x256xf32>
    %c0_3 = arith.constant 0 : index
    %c0_4 = arith.constant 0 : index
    %4 = vector.load %arg3[%c0_3, %c0_4] : memref<2x256xf32, #tpu.memory_space<vmem>>, vector<2x256xf32>
    tpu.vector_store %arg3[%c0_3, %c0_4], %3 {strides = array<i32>} : memref<2x256xf32, #tpu.memory_space<vmem>>, vector<2x256xf32>,
    return
  }
  func.func @transform_0(%arg0: i32) -> (i32, i32) {
    %c0_i32 = arith.constant 0 : i32
    %c0_i32_0 = arith.constant 0 : i32
    return %arg0, %c0_i32 : i32, i32
  }
  func.func @transform_1(%arg0: i32) -> (i32, i32) {
    %c0_i32 = arith.constant 0 : i32
    %c0_i32_0 = arith.constant 0 : i32
    %c0_i32_1 = arith.constant 0 : i32
    return %c0_i32, %c0_i32_0 : i32, i32
  }
  func.func @transform_2(%arg0: i32) -> (i32, i32) {
    %c0_i32 = arith.constant 0 : i32
    %c0_i32_0 = arith.constant 0 : i32
    return %arg0, %c0_i32 : i32, i32
  }
}

</mosaic_0001>

<bundles_post_ra>
// kernel: tpu_custom_call.1
= control target key start
LH: loop header
LB: loop body
LE: loop exit
PB: predicated region body
PF: predicated region fallthrough
CT: control target
= control target key end

     0   :  { %7 = vsyncpa [#allocation3], 0  ;;  %s177_s0 = inlined_call_operand.hbm [shape: f32[2,256], index: 0, kind: input, shape index: {}]   ;;  %s178_s1 = inlined_call_operand.hbm [shape: f32[1,256], index: 1, kind: input, shape index: {}]   ;;  %s179_s2 = inlined_call_operand.hbm [shape: f32[2,256], index: 2, kind: output, shape index: {}]  }
   0x1   :  { %8 = vsyncpa [#allocation6], 0 }
   0x2   :  { %9 = vsyncpa [#allocation4], 0  ;;  %s15_s11 = sshll.u32 %s177_s0, 4  ;;  %s150_s12 = smov [#allocation2]   ;;  %s16_s11 = int_to_ptr.hbm [resolvable:$true] %s15_s11 }
   0x3   :  { %s17_s13 = sshll.u32 %s150_s12, 4  ;;  %s26_s16 = sshll.u32 %s178_s1, 4  ;;  %s18_s13 = int_to_ptr.vmem [resolvable:$true] %s17_s13  ;;  %s27_s16 = int_to_ptr.hbm [resolvable:$true] %s26_s16 }
   0x4   :  { %20 = dma.hbm_to_vmem [thread:$0]  %s16_s11, 64, %s18_s13, [#allocation3]  }
   0x5   :  { %s151_s17 = smov [#allocation5]  }
   0x6   :  { %s28_s18 = sshll.u32 %s151_s17, 4  ;;  %s29_s18 = int_to_ptr.vmem [resolvable:$true] %s28_s18 }
   0x7   :  { %31 = dma.hbm_to_vmem [thread:$0]  %s27_s16, 32, %s29_s18, [#allocation6]  }
   0x8   :  { %144 = dma.done.wait [#allocation3], 64  }
   0x9   :  { %145 = vsyncadd [#allocation3], 4294967232 }
   0xa   :  { %146 = dma.done.wait [#allocation6], 32  }
   0xb   :  { %147 = vsyncadd [#allocation6], 4294967264  ;;  %v41_v0 = vld [vmem:[#allocation5] sm:$0x3]  ;;  %vm46_vm0 = vcmask 1041408   ;;  %s152_s0 = smov [#allocation7]  }
   0xc   :  { %v43_v1 = vperm.slane %v41_v0, 0  ;;  %v44_v2 = vperm.slane %v41_v0, 1  ;;  %v40_v3 = vld [vmem:[#allocation2] sm:$0xf]  ;;  %s56_s19 = sshll.u32 %s152_s0, 4  ;;  %s58_s21 = sshll.u32 %s179_s2, 4  ;;  %s57_s19 = int_to_ptr.vmem [resolvable:$true] %s56_s19  ;;  %s59_s21 = int_to_ptr.hbm [resolvable:$true] %s58_s21 }
   0xe   :  { %v45_v4 = vrot.slane %v44_v2, 6 }
  0x10   :  { %v47_v5 = vsel %vm46_vm0, %v43_v1, %v45_v4 }
  0x11   :  { %v49_v6 = vadd.f32 %v47_v5, %v40_v3 }
  0x13   :  { %50 = vst [vmem:[#allocation7] sm:$0xf] %v49_v6 }
  0x14   :  { %61 = dma.vmem_to_hbm [thread:$0]  %s57_s19, 64, %s59_s21, [#allocation4]  }
  0x15   :  { %148 = dma.done.wait [#allocation4], 64  }
  0x16   :  { %149 = vsyncadd [#allocation4], 4294967232 }
  0x17   :  { %66 = vsyncpa [#allocation3], 1 }
  0x18   :  { %67 = vsyncpa [#allocation6], 1 }
  0x19   :  { %68 = vsyncpa [#allocation4], 1 }

</bundles_post_ra>
